<compile_context>
chip_gen: v5e
topology: v5e:2x2
jax: 0.10.0
libtpu: 0.0.40
codegen_flags: <defaults>
</compile_context>

<pallas_src>
import jax
import jax.numpy as jnp
from jax.experimental import pallas as pl
from jax.experimental.pallas import tpu as pltpu


def _head_kernel(x_ref, w_ref, o_ref):
    # x_ref: (Bb, T, C)   batch tile (whole batch by default)
    # w_ref: (C, 3H)      fused [W_k | W_q*scale | W_v]
    # o_ref: (Bb, T, H)
    Bb, T, C = x_ref.shape
    H3 = w_ref.shape[1]
    H = H3 // 3

    x = x_ref[...]            # keep operand dtype (bf16 stays bf16 on the MXU)
    w = w_ref[...]
    cdt = x.dtype

    # Fused projection: one (Bb*T, C) @ (C, 3H) matmul, f32 accumulation.
    kqv = jnp.dot(x.reshape(Bb * T, C), w,
                  preferred_element_type=jnp.float32)          # (Bb*T, 3H) f32
    kqv = kqv.reshape(Bb, T, H3)

    k = kqv[:, :, 0:H].astype(cdt)          # (Bb, T, H)
    q = kqv[:, :, H:2 * H].astype(cdt)      # scale already folded into W_q
    v = kqv[:, :, 2 * H:3 * H].astype(cdt)

    # Scores: contract the H axis of q against the H axis of k (no explicit k.T).
    wei = jax.lax.dot_general(
        q, k,
        dimension_numbers=(((2,), (2,)), ((0,), (0,))),
        preferred_element_type=jnp.float32)                     # (Bb, T, T) f32

    # Causal mask (tril): future positions -> -inf. Built once, broadcast over Bb.
    row = jax.lax.broadcasted_iota(jnp.int32, (T, T), 0)
    col = jax.lax.broadcasted_iota(jnp.int32, (T, T), 1)
    wei = jnp.where((col <= row)[None, :, :], wei, -jnp.inf)

    # Numerically stable softmax; reciprocal on the EUP (otherwise-idle slot).
    # Diagonal is always unmasked, so the row max is finite (no inf-inf NaNs).
    wei = jnp.exp(wei - jnp.max(wei, axis=-1, keepdims=True))
    wei = wei * pl.reciprocal(jnp.sum(wei, axis=-1, keepdims=True), approx=True)

    out = jax.lax.dot_general(
        wei.astype(cdt), v,
        dimension_numbers=(((2,), (1,)), ((0,), (0,))),
        preferred_element_type=jnp.float32)                     # (Bb, T, H)
    o_ref[...] = out.astype(o_ref.dtype)


def head_forward(x, w_key, w_query, w_value, *, block_b=None):
    """Single attention head forward pass.

    x:        (B, T, C)
    w_key:    (C, H)   (transposed relative to nn.Linear.weight)
    w_query:  (C, H)
    w_value:  (C, H)
    returns:  (B, T, H)

    block_b: batch elements per grid step (default: whole batch in one step).
    """
    B, T, C = x.shape
    H = w_key.shape[1]
    if block_b is None:
        block_b = B
    assert B % block_b == 0, "block_b must divide B"

    # Fuse K|Q|V and fold the 1/sqrt(H) attention scale into the query weight.
    w_kqv = jnp.concatenate(
        [w_key, w_query * (H ** -0.5), w_value], axis=1).astype(x.dtype)  # (C, 3H)

    grid = (B // block_b,)
    return pl.pallas_call(
        _head_kernel,
        out_shape=jax.ShapeDtypeStruct((B, T, H), x.dtype),
        grid_spec=pltpu.PrefetchScalarGridSpec(
            num_scalar_prefetch=0,
            grid=grid,
            in_specs=[
                pl.BlockSpec((block_b, T, C), lambda b: (b, 0, 0)),
                pl.BlockSpec((C, 3 * H), lambda b: (0, 0)),
            ],
            out_specs=pl.BlockSpec((block_b, T, H), lambda b: (b, 0, 0)),
        ),
        compiler_params=pltpu.CompilerParams(
            dimension_semantics=("parallel",),
        ),
    )(x, w_kqv)


def head_reference(x, w_key, w_query, w_value):
    """Pure-JAX reference matching the PyTorch forward."""
    k = x @ w_key
    q = x @ w_query
    v = x @ w_value
    scale = k.shape[-1] ** -0.5
    wei = jnp.einsum("btd,bsd->bts", q, k) * scale
    T = x.shape[1]
    mask = jnp.tril(jnp.ones((T, T), dtype=bool))
    wei = jnp.where(mask, wei, -jnp.inf)
    wei = jax.nn.softmax(wei, axis=-1)
    return wei @ v


if __name__ == "__main__":
    # Small shapes consistent with the module: n_embd=32, block_size=8, head_size=16
    B, T, C, H = 2, 8, 32, 16

    key = jax.random.PRNGKey(0)
    kx, kk, kq, kv = jax.random.split(key, 4)

    x = jax.random.normal(kx, (B, T, C), dtype=jnp.float32)
    # Deterministic init, stored as (C, H) = nn.Linear.weight.T
    w_key = jax.random.normal(kk, (C, H), dtype=jnp.float32) * (C ** -0.5)
    w_query = jax.random.normal(kq, (C, H), dtype=jnp.float32) * (C ** -0.5)
    w_value = jax.random.normal(kv, (C, H), dtype=jnp.float32) * (C ** -0.5)

    out = jax.block_until_ready(head_forward(x, w_key, w_query, w_value))
    ref = head_reference(x, w_key, w_query, w_value)

    assert out.shape == (B, T, H)
    # Tolerance loosened slightly for the EUP approximate reciprocal in softmax.
    assert jnp.allclose(out, ref, atol=2e-2, rtol=2e-2), "mismatch vs reference"

    print("KERNEL_OK")
</pallas_src>

<mosaic_0001>
module attributes {stable_mosaic.version = 11 : i64} {
  func.func @_head_kernel(%arg0: i32, %arg1: memref<2x8x32xf32, #tpu.memory_space<vmem>>, %arg2: memref<32x48xf32, #tpu.memory_space<vmem>>, %arg3: memref<2x8x16xf32, #tpu.memory_space<vmem>>) attributes {dimension_semantics = [#tpu.dimension_semantics<parallel>], iteration_bounds = array<i64: 1>, scalar_prefetch = 0 : i64, scratch_operands = 0 : i64, tpu.core_type = #tpu.core_type<tc>, window_params = [{transform_indices = @transform_0, window_bounds = array<i64: 2, 8, 32>}, {pipeline_mode = #tpu.pipeline_mode<synchronous>, transform_indices = @transform_1, window_bounds = array<i64: 32, 48>}, {transform_indices = @transform_2, window_bounds = array<i64: 2, 8, 16>}]} {
    %c0 = arith.constant 0 : index
    %c0_0 = arith.constant 0 : index
    %c0_1 = arith.constant 0 : index
    %0 = vector.load %arg1[%c0, %c0_0, %c0_1] : memref<2x8x32xf32, #tpu.memory_space<vmem>>, vector<2x8x32xf32>
    %c0_2 = arith.constant 0 : index
    %c0_3 = arith.constant 0 : index
    %1 = vector.load %arg2[%c0_2, %c0_3] : memref<32x48xf32, #tpu.memory_space<vmem>>, vector<32x48xf32>
    %2 = vector.shape_cast %0 : vector<2x8x32xf32> to vector<16x32xf32>
    %cst = arith.constant dense<0.000000e+00> : vector<16x48xf32>
    %3 = tpu.matmul %2, %1, %cst {dimension_numbers = #tpu.dot_dimension_numbers<[1], [0], [0], [1], [0, 0, 1, 1], [], []>} : vector<16x32xf32>, vector<32x48xf32>, vector<16x48xf32> -> vector<16x48xf32>
    %4 = vector.shape_cast %3 : vector<16x48xf32> to vector<2x8x48xf32>
    %5 = vector.extract_strided_slice %4 {offsets = [0, 0, 0], sizes = [2, 8, 16], strides = [1, 1, 1]} : vector<2x8x48xf32> to vector<2x8x16xf32>
    %6 = vector.extract_strided_slice %4 {offsets = [0, 0, 16], sizes = [2, 8, 16], strides = [1, 1, 1]} : vector<2x8x48xf32> to vector<2x8x16xf32>
    %7 = vector.extract_strided_slice %4 {offsets = [0, 0, 32], sizes = [2, 8, 16], strides = [1, 1, 1]} : vector<2x8x48xf32> to vector<2x8x16xf32>
    %cst_4 = arith.constant dense<0.000000e+00> : vector<2x8x8xf32>
    %8 = tpu.matmul %6, %5, %cst_4 {dimension_numbers = #tpu.dot_dimension_numbers<[2], [2], [1], [1], [0, 0, 0, 1, 1, 1], [0], [0]>} : vector<2x8x16xf32>, vector<2x8x16xf32>, vector<2x8x8xf32> -> vector<2x8x8xf32>
    %9 = tpu.iota {dimensions = array<i32: 0>} : vector<8x8xi32>
    %10 = tpu.iota {dimensions = array<i32: 1>} : vector<8x8xi32>
    %11 = arith.cmpi sle, %10, %9 : vector<8x8xi32>
    %12 = vector.shape_cast %11 : vector<8x8xi1> to vector<1x8x8xi1>
    %cst_5 = arith.constant 0xFF800000 : f32
    %13 = vector.shape_cast %12 : vector<1x8x8xi1> to vector<1x8x8xi1>
    %14 = vector.broadcast %13 : vector<1x8x8xi1> to vector<2x8x8xi1>
    %15 = vector.broadcast %cst_5 : f32 to vector<2x8x8xf32>
    %16 = arith.select %14, %8, %15 : vector<2x8x8xi1>, vector<2x8x8xf32>
    %cst_6 = arith.constant dense<0xFF800000> : vector<2x8xf32>
    %17 = vector.multi_reduction <maximumf>, %16, %cst_6 [2] : vector<2x8x8xf32> to vector<2x8xf32>
    %18 = vector.shape_cast %17 : vector<2x8xf32> to vector<2x8x1xf32>
    %19 = vector.broadcast %18 : vector<2x8x1xf32> to vector<2x8x8xf32>
    %20 = arith.subf %16, %19 : vector<2x8x8xf32>
    %21 = math.exp %20 : vector<2x8x8xf32>
    %cst_7 = arith.constant dense<0.000000e+00> : vector<2x8xf32>
    %22 = vector.multi_reduction <add>, %21, %cst_7 [2] : vector<2x8x8xf32> to vector<2x8xf32>
    %23 = vector.shape_cast %22 : vector<2x8xf32> to vector<2x8x1xf32>
    %24 = tpu.reciprocal %23 {approx = true} : vector<2x8x1xf32> -> vector<2x8x1xf32>
    %25 = vector.broadcast %24 : vector<2x8x1xf32> to vector<2x8x8xf32>
    %26 = arith.mulf %21, %25 : vector<2x8x8xf32>
    %cst_8 = arith.constant dense<0.000000e+00> : vector<2x8x16xf32>
    %27 = tpu.matmul %26, %7, %cst_8 {dimension_numbers = #tpu.dot_dimension_numbers<[2], [1], [1], [2], [0, 0, 0, 1, 1, 2], [0], [0]>} : vector<2x8x8xf32>, vector<2x8x16xf32>, vector<2x8x16xf32> -> vector<2x8x16xf32>
    %c0_9 = arith.constant 0 : index
    %c0_10 = arith.constant 0 : index
    %c0_11 = arith.constant 0 : index
    %28 = vector.load %arg3[%c0_9, %c0_10, %c0_11] : memref<2x8x16xf32, #tpu.memory_space<vmem>>, vector<2x8x16xf32>
    tpu.vector_store %arg3[%c0_9, %c0_10, %c0_11], %27 {strides = array<i32>} : memref<2x8x16xf32, #tpu.memory_space<vmem>>, vector<2x8x16xf32>,
    return
  }
  func.func @transform_0(%arg0: i32) -> (i32, i32, i32) {
    %c0_i32 = arith.constant 0 : i32
    %c0_i32_0 = arith.constant 0 : i32
    %c0_i32_1 = arith.constant 0 : i32
    return %arg0, %c0_i32, %c0_i32_0 : i32, i32, i32
  }
  func.func @transform_1(%arg0: i32) -> (i32, i32) {
    %c0_i32 = arith.constant 0 : i32
    %c0_i32_0 = arith.constant 0 : i32
    %c0_i32_1 = arith.constant 0 : i32
    return %c0_i32, %c0_i32_0 : i32, i32
  }
  func.func @transform_2(%arg0: i32) -> (i32, i32, i32) {
    %c0_i32 = arith.constant 0 : i32
    %c0_i32_0 = arith.constant 0 : i32
    %c0_i32_1 = arith.constant 0 : i32
    return %arg0, %c0_i32, %c0_i32_0 : i32, i32, i32
  }
}

</mosaic_0001>

<bundles_post_ra>
// kernel: tpu_custom_call.1
= control target key start
LH: loop header
LB: loop body
LE: loop exit
PB: predicated region body
PF: predicated region fallthrough
CT: control target
= control target key end

     0   :  { %7 = vsyncpa [#allocation3], 0  ;;  %s394_s0 = inlined_call_operand.hbm [shape: f32[2,8,32], index: 0, kind: input, shape index: {}]   ;;  %s395_s1 = inlined_call_operand.hbm [shape: f32[32,48], index: 1, kind: input, shape index: {}]   ;;  %s396_s2 = inlined_call_operand.hbm [shape: f32[2,8,16], index: 2, kind: output, shape index: {}]  }
   0x1   :  { %8 = vsyncpa [#allocation6], 0 }
   0x2   :  { %9 = vsyncpa [#allocation4], 0  ;;  %s14_s11 = sshll.u32 %s394_s0, 4  ;;  %s342_s12 = smov [#allocation2]   ;;  %s15_s11 = int_to_ptr.hbm [resolvable:$true] %s14_s11 }
   0x3   :  { %s16_s13 = sshll.u32 %s342_s12, 4  ;;  %s27_s16 = sshll.u32 %s395_s1, 4  ;;  %s17_s13 = int_to_ptr.vmem [resolvable:$true] %s16_s13  ;;  %s28_s16 = int_to_ptr.hbm [resolvable:$true] %s27_s16 }
   0x4   :  { %s343_s17 = smov 128   ;;  %s344_s18 = smov 8  }
   0x5   :  { %22 = dma.hbm_to_vmem [thread:$0]  %s15_s11, 256, %s17_s13, [#allocation3], %s343_s17, %s343_s17, %s344_s18  }
   0x6   :  { %s345_s19 = smov [#allocation5]  }
   0x7   :  { %s29_s20 = sshll.u32 %s345_s19, 4  ;;  %s30_s20 = int_to_ptr.vmem [resolvable:$true] %s29_s20 }
   0x8   :  { %35 = dma.hbm_to_vmem [thread:$0]  %s28_s16, 512, %s30_s20, [#allocation6], %s343_s17, %s343_s17, %s344_s18  }
   0x9   :  { %336 = dma.done.wait [#allocation3], 256  }
   0xa   :  { %337 = vsyncadd [#allocation3], 4294967040 }
   0xb   :  { %338 = dma.done.wait [#allocation6], 512  }
   0xc   :  { %339 = vsyncadd [#allocation6], 4294966784  ;;  %v49_v0 = vld [vmem:[#allocation5 + $0x18] sm:$0xff]  ;;  %v48_v1 = vld [vmem:[#allocation5 + $0x10] sm:$0xff]  ;;  %vm50_vm0 = vcmask 261120   ;;  %vm83_vm1 = vcmask 130048   ;;  %v135_v11 = vlaneseq }
   0xd   :  { %69 = vmatpush.msra.mxu0 %v49_v0  ;;  %v47_v2 = vld [vmem:[#allocation5 + $0x8] sm:$0xff]  ;;  %v46_v3 = vld [vmem:[#allocation5] sm:$0xff]  ;;  %v44_v4 = vld [vmem:[#allocation2] sm:$0xff]  ;;  %s346_s0 = smov 112   ;;  %s347_s1 = smov 96   ;;  %vm144_vm3 = vcmask 64512  }
   0xe   :  { %v45_v5 = vld [vmem:[#allocation2 + $0x8] sm:$0xff]  ;;  %v136_v12 = vshrl.u32 %v135_v11, 7  ;;  %v138_v13 = vand.u32 127, %v135_v11  ;;  %s348_s21 = smov [#allocation7]   ;;  %s227_s25 = sshll.u32 %s396_s2, 4  ;;  %s228_s25 = int_to_ptr.hbm [resolvable:$true] %s227_s25 }
   0xf   :  { %70 = vmatpush.msra.mxu0 %v48_v1  ;;  %s225_s22 = sshll.u32 %s348_s21, 4  ;;  %s226_s22 = int_to_ptr.vmem [resolvable:$true] %s225_s22 }
  0x10   :  { %vm139_vm2 = vcmp.le.s32.totalorder %v138_v13, %v136_v12 }
  0x11   :  { %71 = vmatpush.msra.mxu0 %v47_v2 }
  0x13   :  { %72 = vmatpush.msra.mxu0 %v46_v3 }
  0x14   :  { %241 = vmatmul.msk.f32.vlgmr.msra.gmra.mxu0 %vm50_vm0, %v44_v4 }
  0x1c   :  { %242 = vmatmul.msk.f32.gmra.mxu0 %vm50_vm0, %v45_v5 }
  0x91   :  { %v74_v6 = vpop.f32.mrf.mxu0 }
  0x92   :  { %81 = vrot.lane.b32.xlu0 %v74_v6, %s346_s0  ;;  %243 = vmatpush.xpose.msk.msra.mxu1 %vm83_vm1, %v74_v6 }
  0x99   :  { %v77_v7 = vpop.f32.mrf.mxu0 }
  0x9a   :  { %109 = vrot.lane.b32.xlu0 %v77_v7, %s346_s0  ;;  %245 = vmatpush.xpose.msk.msra.mxu2 %vm83_vm1, %v77_v7 }
  0xa2   :  { %167 = vrot.lane.b32.xlu0 %v74_v6, %s347_s1 }
 0x104   :  { %v82_v8 = vpop.permute.xlu0 %81 }
 0x105   :  { %244 = vmatmul.msk.f32.vlgmr.msra.gmra.mxu1 %vm83_vm1, %v82_v8 }
 0x10c   :  { %v110_v9 = vpop.permute.xlu0 %109 }
 0x10d   :  { %246 = vmatmul.msk.f32.vlgmr.msra.gmra.mxu2 %vm83_vm1, %v110_v9 }
 0x114   :  { %v168_v10 = vpop.permute.xlu0 %167 }
 0x115   :  { %188 = vmatpush.msra.mxu3 %v168_v10 }
 0x182   :  { %v105_v14 = vpop.f32.mrf.mxu1 }
 0x183   :  { %v142_v15 = vsel %vm139_vm2, %v105_v14, -inf }
 0x184   :  { %v145_v16 = vsel %vm144_vm3, %v142_v15, -inf }
 0x185   :  { %146 = vmax.xlane.f32.xlu1 %v145_v16 }
 0x190   :  { %v132_v17 = vpop.f32.mrf.mxu2 }
 0x191   :  { %v143_v18 = vsel %vm139_vm2, %v132_v17, -inf }
 0x192   :  { %v148_v19 = vsel %vm144_vm3, %v143_v18, -inf }
 0x193   :  { %149 = vmax.xlane.f32.xlu1 %v148_v19 }
 0x1ac   :  { %193 = vrot.lane.b32.xlu1 %v77_v7, %s347_s1 }
 0x1f8   :  { %v147_v20 = vpop.xlane.xlu1 %146 }
 0x1f9   :  { %v151_v21 = vsub.f32 %v142_v15, %v147_v20 }
 0x1fb   :  { %v153_v22 = vmul.f32 1.442695, %v151_v21 }
 0x1fd   :  { %256 = vpow2.f32 %v153_v22 }
 0x203   :  { %v257_v23 = vpop.eup %256 }
 0x204   :  { %v157_v24 = vsel %vm144_vm3, %v257_v23, 0.0 }
 0x205   :  { %158 = vadd.xlane.f32.xlu2 %v157_v24 }
 0x206   :  { %v150_v25 = vpop.xlane.xlu1 %149 }
 0x207   :  { %v152_v26 = vsub.f32 %v143_v18, %v150_v25 }
 0x209   :  { %v155_v27 = vmul.f32 1.442695, %v152_v26 }
 0x20b   :  { %258 = vpow2.f32 %v155_v27 }
 0x211   :  { %v259_v28 = vpop.eup %258 }
 0x212   :  { %v160_v29 = vsel %vm144_vm3, %v259_v28, 0.0 }
 0x213   :  { %161 = vadd.xlane.f32.xlu2 %v160_v29 }
 0x21e   :  { %v194_v30 = vpop.permute.xlu1 %193 }
 0x21f   :  { %214 = vmatpush.msrb.mxu3 %v194_v30 }
 0x278   :  { %v159_v31 = vpop.xlane.xlu2 %158 }
 0x279   :  { %260 = vrcp.f32 %v159_v31 }
 0x27f   :  { %v261_v32 = vpop.eup %260 }
 0x280   :  { %v165_v33 = vmul.f32 %v261_v32, %v257_v23 }
 0x282   :  { %247 = vmatmul.msk.f32.vlgmr.msra.gmra.mxu3 %vm144_vm3, %v165_v33 }
 0x286   :  { %v162_v34 = vpop.xlane.xlu2 %161 }
 0x287   :  { %262 = vrcp.f32 %v162_v34 }
 0x28d   :  { %v263_v35 = vpop.eup %262 }
 0x28e   :  { %v166_v36 = vmul.f32 %v263_v35, %v259_v28 }
 0x290   :  { %248 = vmatmul.msk.f32.vlgmr.msrb.gmra.mxu3 %vm144_vm3, %v166_v36 }
 0x305   :  { %v190_v37 = vpop.f32.mrf.mxu3 }
 0x306   :  { %219 = vst.msk [vmem:[#allocation7] sm:$0xff] %vm83_vm1, %v190_v37 }
 0x313   :  { %v216_v38 = vpop.f32.mrf.mxu3 }
 0x314   :  { %220 = vst.msk [vmem:[#allocation7 + $0x8] sm:$0xff] %vm83_vm1, %v216_v38 }
 0x315   :  { %233 = dma.vmem_to_hbm [thread:$0]  %s226_s22, 256, %s228_s25, [#allocation4], %s343_s17, %s343_s17, %s344_s18  }
 0x316   :  { %340 = dma.done.wait [#allocation4], 256  }
 0x317   :  { %341 = vsyncadd [#allocation4], 4294967040 }
 0x318   :  { %238 = vsyncpa [#allocation3], 1 }
 0x319   :  { %239 = vsyncpa [#allocation6], 1 }
 0x31a   :  { %240 = vsyncpa [#allocation4], 1 }

</bundles_post_ra>
